<compile_context>
chip_gen: v6e
topology: v6e:2x2x1
jax: 0.10.0
libtpu: 0.0.40
codegen_flags: <defaults>
</compile_context>

<pallas_src>
import functools

import jax
import jax.numpy as jnp
from jax.experimental import pallas as pl
from jax.experimental.pallas import tpu as pltpu

_LANE = 128
# 1024 rows * 128 lanes * 4 B = 512 KiB per input slab; 3 inputs double-buffered
# plus the accumulator is ~3.5 MiB live -> comfortably inside scoped VMEM on
# v5e (16 MiB default) / v6e / v7x (32 MiB).
_MAX_TILE_ROWS = 1024


def _kp2d_loss_kernel(pred_ref, gt_ref, conf_ref, out_ref, acc_ref, *,
                      loss_type, num_steps):
    """One grid step over lane-dense (tile_rows, 128) f32 slabs."""
    diff = pred_ref[...] - gt_ref[...]
    if loss_type == "l1":
        err = jnp.abs(diff)            # nn.L1Loss(reduction='none')
    elif loss_type == "l2":
        err = diff * diff              # nn.MSELoss(reduction='none')
    else:
        raise NotImplementedError("Unsupported loss function")
    cur = conf_ref[...] * err

    if num_steps == 1:
        # Common case: no accumulator traffic at all.
        out_ref[0, 0] = jnp.sum(cur)
    else:
        i = pl.program_id(0)

        @pl.when(i == 0)
        def _():
            acc_ref[...] = cur         # first step writes (no zero-init pass)

        @pl.when(jnp.logical_and(i > 0, i < num_steps - 1))
        def _():
            acc_ref[...] += cur        # full-width VPU, no per-step reduce

        @pl.when(i == num_steps - 1)
        def _():
            # Fold the last tile straight into the single XLU reduce.
            out_ref[0, 0] = jnp.sum(acc_ref[...] + cur)


def _to_lane_dense(flat, padded_size):
    """Zero-pad a flat f32 vector and reshape to (padded_size // 128, 128)."""
    flat = jnp.pad(flat, (0, padded_size - flat.shape[0]))
    return flat.reshape(padded_size // _LANE, _LANE)


def keypoint_2d_loss(pred_keypoints_2d, gt_keypoints_2d, loss_type: str = "l1",
                     max_tile_rows: int = _MAX_TILE_ROWS):
    """JAX wrapper reproducing Keypoint2DLoss.forward (returns a scalar)."""
    B, N, C = pred_keypoints_2d.shape
    assert C == 2, "pred_keypoints_2d must be [B, N, 2]"
    assert gt_keypoints_2d.shape == (B, N, 3), "gt_keypoints_2d must be [B, N, 3]"

    # f32 everywhere (keep even if inputs are bf16: v5e VPU has no bf16 path).
    pred = pred_keypoints_2d.astype(jnp.float32)
    gt = gt_keypoints_2d.astype(jnp.float32)
    gt_xy = gt[..., :2]
    conf = jnp.broadcast_to(gt[..., 2:3], (B, N, 2))   # conf repeated over x,y

    # Flatten to lane-dense slabs.  Zero padding is exact (pred=gt=0 -> err=0).
    total = B * N * 2
    rows = max(1, -(-total // _LANE))
    tile_rows = min(max_tile_rows, ((rows + 7) // 8) * 8)   # multiple of 8
    padded_rows = -(-rows // tile_rows) * tile_rows
    grid = padded_rows // tile_rows
    padded_size = padded_rows * _LANE

    pred2d = _to_lane_dense(pred.reshape(-1), padded_size)
    gt2d = _to_lane_dense(gt_xy.reshape(-1), padded_size)
    conf2d = _to_lane_dense(conf.reshape(-1), padded_size)

    kernel = functools.partial(_kp2d_loss_kernel, loss_type=loss_type,
                               num_steps=grid)
    block = pl.BlockSpec((tile_rows, _LANE), lambda i: (i, 0))

    out = pl.pallas_call(
        kernel,
        out_shape=jax.ShapeDtypeStruct((1, 1), jnp.float32),
        grid=(grid,),
        in_specs=[block, block, block],
        # Scalar result in SMEM; written once on the last grid step.
        out_specs=pl.BlockSpec(memory_space=pltpu.SMEM),
        scratch_shapes=[pltpu.VMEM((tile_rows, _LANE), jnp.float32)],
        compiler_params=pltpu.CompilerParams(
            # Resident accumulator / output across the grid -> reduction axis.
            dimension_semantics=("arbitrary",),
        ),
        cost_estimate=pl.CostEstimate(
            flops=3 * total,               # sub, mul, add (abs ~free)
            transcendentals=0,
            bytes_accessed=3 * padded_size * 4 + 4,
        ),
    )(pred2d, gt2d, conf2d)

    # TODO(synk): for real training, fuse this tiny mem-bound loss into an
    # adjacent kernel / let XLA fuse it instead of a standalone pallas_call.
    return out[0, 0]


def _reference(pred, gt, loss_type="l1"):
    """Pure-JAX reference mirroring the PyTorch forward exactly."""
    conf = gt[:, :, -1][..., None]
    diff = pred.astype(jnp.float32) - gt[:, :, :-1].astype(jnp.float32)
    err = jnp.abs(diff) if loss_type == "l1" else diff * diff
    loss = (conf * err).sum(axis=(1, 2))
    return loss.sum()


def _make_inputs(key, B, N):
    k1, k2, k3 = jax.random.split(key, 3)
    pred = jax.random.normal(k1, (B, N, 2), dtype=jnp.float32)
    gt_xy = jax.random.normal(k2, (B, N, 2), dtype=jnp.float32)
    conf = jax.random.uniform(k3, (B, N, 1), dtype=jnp.float32)
    gt = jnp.concatenate([gt_xy, conf], axis=-1)
    return pred, gt


if __name__ == "__main__":
    key = jax.random.PRNGKey(0)
    keys = jax.random.split(key, 4)

    # Small canonical case (single grid step, no accumulator path), l1 and l2.
    pred, gt = _make_inputs(keys[0], B=2, N=8)
    for lt in ("l1", "l2"):
        out = jax.block_until_ready(keypoint_2d_loss(pred, gt, loss_type=lt))
        ref = _reference(pred, gt, loss_type=lt)
        assert jnp.allclose(out, ref, rtol=1e-5, atol=1e-4), (lt, out, ref)

    # Odd keypoint count -> exercises the zero-padding path.
    pred, gt = _make_inputs(keys[1], B=4, N=17)
    out = jax.block_until_ready(keypoint_2d_loss(pred, gt, loss_type="l1"))
    ref = _reference(pred, gt, loss_type="l1")
    assert jnp.allclose(out, ref, rtol=1e-5, atol=1e-4), (out, ref)

    # Force a 2-step grid (small tile cap) -> exercises first/last acc path.
    pred, gt = _make_inputs(keys[2], B=8, N=128)
    out = jax.block_until_ready(
        keypoint_2d_loss(pred, gt, loss_type="l1", max_tile_rows=8))
    ref = _reference(pred, gt, loss_type="l1")
    assert jnp.allclose(out, ref, rtol=1e-5, atol=1e-3), (out, ref)

    # Force a 3-step grid -> exercises the middle accumulate branch too.
    pred, gt = _make_inputs(keys[3], B=8, N=192)
    out = jax.block_until_ready(
        keypoint_2d_loss(pred, gt, loss_type="l2", max_tile_rows=8))
    ref = _reference(pred, gt, loss_type="l2")
    assert jnp.allclose(out, ref, rtol=1e-5, atol=1e-3), (out, ref)

    print("KERNEL_OK")
</pallas_src>

<mosaic_0001>
module attributes {stable_mosaic.version = 11 : i64} {
  func.func @_kp2d_loss_kernel(%arg0: i32, %arg1: memref<8x128xf32, #tpu.memory_space<vmem>>, %arg2: memref<8x128xf32, #tpu.memory_space<vmem>>, %arg3: memref<8x128xf32, #tpu.memory_space<vmem>>, %arg4: memref<1x1xf32, #tpu.memory_space<smem>>, %arg5: memref<8x128xf32, #tpu.memory_space<vmem>>) attributes {dimension_semantics = [#tpu.dimension_semantics<arbitrary>], iteration_bounds = array<i64: 1>, scalar_prefetch = 0 : i64, scratch_operands = 1 : i64, tpu.core_type = #tpu.core_type<tc>, window_params = [{transform_indices = @transform_0, window_bounds = array<i64: 8, 128>}, {transform_indices = @transform_1, window_bounds = array<i64: 8, 128>}, {transform_indices = @transform_2, window_bounds = array<i64: 8, 128>}, {transform_indices = @transform_3, window_bounds = array<i64: 1, 1>}]} {
    %c0 = arith.constant 0 : index
    %c0_0 = arith.constant 0 : index
    %0 = vector.load %arg1[%c0, %c0_0] : memref<8x128xf32, #tpu.memory_space<vmem>>, vector<8x128xf32>
    %c0_1 = arith.constant 0 : index
    %c0_2 = arith.constant 0 : index
    %1 = vector.load %arg2[%c0_1, %c0_2] : memref<8x128xf32, #tpu.memory_space<vmem>>, vector<8x128xf32>
    %2 = arith.subf %0, %1 : vector<8x128xf32>
    %3 = math.absf %2 : vector<8x128xf32>
    %c0_3 = arith.constant 0 : index
    %c0_4 = arith.constant 0 : index
    %4 = vector.load %arg3[%c0_3, %c0_4] : memref<8x128xf32, #tpu.memory_space<vmem>>, vector<8x128xf32>
    %5 = arith.mulf %4, %3 : vector<8x128xf32>
    %6 = vector.shape_cast %5 : vector<8x128xf32> to vector<1x8x128xf32>
    %cst = arith.constant dense<0.000000e+00> : vector<1xf32>
    %7 = vector.multi_reduction <add>, %6, %cst [1, 2] : vector<1x8x128xf32> to vector<1xf32>
    %8 = vector.shape_cast %7 : vector<1xf32> to vector<1x1x1xf32>
    %9 = vector.extract %8[0, 0, 0] : f32 from vector<1x1x1xf32>
    %c0_5 = arith.constant 0 : index
    %c0_6 = arith.constant 0 : index
    %10 = memref.load %arg4[%c0_5, %c0_6] : memref<1x1xf32, #tpu.memory_space<smem>>
    memref.store %9, %arg4[%c0_5, %c0_6] : memref<1x1xf32, #tpu.memory_space<smem>>
    return
  }
  func.func @transform_0(%arg0: i32) -> (i32, i32) {
    %c0_i32 = arith.constant 0 : i32
    %c0_i32_0 = arith.constant 0 : i32
    return %arg0, %c0_i32 : i32, i32
  }
  func.func @transform_1(%arg0: i32) -> (i32, i32) {
    %c0_i32 = arith.constant 0 : i32
    %c0_i32_0 = arith.constant 0 : i32
    return %arg0, %c0_i32 : i32, i32
  }
  func.func @transform_2(%arg0: i32) -> (i32, i32) {
    %c0_i32 = arith.constant 0 : i32
    %c0_i32_0 = arith.constant 0 : i32
    return %arg0, %c0_i32 : i32, i32
  }
  func.func @transform_3(%arg0: i32) -> (i32, i32) {
    %c0_i32 = arith.constant 0 : i32
    %c0_i32_0 = arith.constant 0 : i32
    %c0_i32_1 = arith.constant 0 : i32
    return %c0_i32, %c0_i32_0 : i32, i32
  }
}

</mosaic_0001>

<bundles_post_ra>
// kernel: tpu_custom_call.1
= control target key start
LH: loop header
LB: loop body
LE: loop exit
PB: predicated region body
PF: predicated region fallthrough
CT: control target
= control target key end

     0   :  { %8 = vsyncpa [#allocation4], 0  ;;  %s198_s0 = inlined_call_operand.hbm [shape: f32[8,128], index: 0, kind: input, shape index: {}]   ;;  %s199_s1 = inlined_call_operand.hbm [shape: f32[8,128], index: 1, kind: input, shape index: {}]   ;;  %s200_s2 = inlined_call_operand.hbm [shape: f32[8,128], index: 2, kind: input, shape index: {}]   ;;  %s201_s3 = inlined_call_operand.hbm [shape: f32[1,1], index: 3, kind: output, shape index: {}]  }
   0x1   :  { %9 = vsyncpa [#allocation7], 0 }
   0x2   :  { %10 = vsyncpa [#allocation5], 0  ;;  %s162_s12 = smov [#allocation6]   ;;  %s163_s14 = smov [#allocation3]  }
   0x3   :  { %s27_s13 = sshll.u32 %s162_s12, 4  ;;  %s17_s15 = sshll.u32 %s163_s14, 4  ;;  %s28_s13 = int_to_ptr.vmem [resolvable:$true] %s27_s13  ;;  %s18_s15 = int_to_ptr.vmem [resolvable:$true] %s17_s15 }
   0x4   :  { %s96_s16 = scalar_lea.vmem %s28_s13, 128  ;;  %p101_p1 = scmp.lt.s32.totalorder %s28_s13, %s28_s13 }
   0x5   :  { %p97_p0 = scmp.ne.s32.totalorder %s28_s13, %s96_s16  ;;  %p102_p2 = scmp.lt.s32.totalorder %s96_s16, %s96_s16 }
   0x7   :  { %p103_p3 = por %p102_p2, %p101_p1 }
   0x9   :  { %p104_p4 = pnand %p103_p3, %p97_p0 }
   0xb   :  { %107 = shalt.err (!%p104_p4)
}
   0xc   :  { %30 = dma.hbm_to_vmem [thread:$0]  %s199_s1, 128, %s28_s13, [#allocation7]  }
   0xd   :  { %s116_s19 = scalar_lea.vmem %s18_s15, 128  ;;  %p121_p6 = scmp.lt.s32.totalorder %s18_s15, %s18_s15 }
   0xe   :  { %p117_p5 = scmp.ne.s32.totalorder %s18_s15, %s116_s19  ;;  %p122_p7 = scmp.lt.s32.totalorder %s116_s19, %s116_s19 }
  0x10   :  { %p123_p8 = por %p122_p7, %p121_p6 }
  0x12   :  { %p124_p9 = pnand %p123_p8, %p117_p5 }
  0x14   :  { %127 = shalt.err (!%p124_p9)
}
  0x15   :  { %20 = dma.hbm_to_vmem [thread:$0]  %s198_s0, 128, %s18_s15, [#allocation4]  }
  0x16   :  { %s164_s22 = smov [#allocation8]  }
  0x17   :  { %s37_s23 = sshll.u32 %s164_s22, 4  ;;  %s38_s23 = int_to_ptr.vmem [resolvable:$true] %s37_s23 }
  0x18   :  { %s136_s24 = scalar_lea.vmem %s38_s23, 128  ;;  %p141_p11 = scmp.lt.s32.totalorder %s38_s23, %s38_s23 }
  0x19   :  { %p137_p10 = scmp.ne.s32.totalorder %s38_s23, %s136_s24  ;;  %p142_p12 = scmp.lt.s32.totalorder %s136_s24, %s136_s24 }
  0x1b   :  { %p143_p13 = por %p142_p12, %p141_p11 }
  0x1d   :  { %p144_p0 = pnand %p143_p13, %p137_p10 }
  0x1f   :  { %147 = shalt.err (!%p144_p0)
}
  0x20   :  { %40 = dma.hbm_to_vmem [thread:$0]  %s200_s2, 128, %s38_s23, [#allocation7]  }
  0x21   :  { %156 = dma.done.wait [#allocation4], 128  }
  0x22   :  { %157 = vsyncadd [#allocation4], 4294967168 }
  0x23   :  { %158 = dma.done.wait [#allocation7], 256  }
  0x24   :  { %159 = vsyncadd [#allocation7], 4294967040  ;;  %v50_v0 = vld [vmem:[#allocation3] sm:$0xff]  ;;  %v51_v1 = vld [vmem:[#allocation6] sm:$0xff]  ;;  %s165_s2 = smov [#allocation9]  }
  0x25   :  { %v52_v2 = vsub.f32 %v50_v0, %v51_v1  ;;  %v54_v3 = vld [vmem:[#allocation8] sm:$0xff] }
  0x27   :  { %v53_v4 = vand.u32 2147483647, %v52_v2 }
  0x29   :  { %v55_v5 = vmul.f32 %v54_v3, %v53_v4 }
  0x2b   :  { %56 = vadd.xlane.f32.xlu0 %v55_v5 }
  0xb4   :  { %v57_v6 = vpop.xlane.xlu0 %56 }
  0xb5   :  { %v58_v7 = vrot.slane %v57_v6, 4 }
  0xb7   :  { %v59_v8 = vadd.f32 %v58_v7, %v57_v6 }
  0xb9   :  { %v60_v9 = vrot.slane %v59_v8, 2 }
  0xbb   :  { %v61_v10 = vadd.f32 %v60_v9, %v59_v8 }
  0xbd   :  { %v62_v11 = vrot.slane %v61_v10, 1 }
  0xbf   :  { %v63_v12 = vadd.f32 %v62_v11, %v61_v10 }
  0xc1   :  { %82 = vpush %v63_v12 }
  0xf2   :  { %s83_s0 = spop %82 }
  0xf3   :  { %66 = sst [smem:[#allocation9]] %s83_s0 }
  0xf4   :  { %74 = dma.smem_to_hbm %s165_s2, 16, %s201_s3, [#allocation5]  }
  0xf5   :  { %160 = dma.done.wait [#allocation5], 16  }
  0xf6   :  { %161 = vsyncadd [#allocation5], 4294967280 }
  0xf7   :  { %78 = sfence }
  0xf8   :  { %79 = vsyncpa [#allocation4], 1 }
  0xf9   :  { %80 = vsyncpa [#allocation7], 1 }
  0xfa   :  { %81 = vsyncpa [#allocation5], 1 }

</bundles_post_ra>
